<compile_context>
chip_gen: v5e
topology: v5e:2x2
jax: 0.10.0
libtpu: 0.0.40
codegen_flags: <defaults>
</compile_context>

<pallas_src>
import jax
import jax.numpy as jnp
import numpy as np
from jax import lax
from jax.experimental import pallas as pl
from jax.experimental.pallas import tpu as pltpu

EPS = 1e-4


def _pick_hw_tile(hw, max_tile=2048):
    """Largest lane-dense tile of the HW axis that obeys Mosaic block rules."""
    if hw <= max_tile:
        return hw  # full-dim block is always legal
    start = max_tile - (max_tile % 128)
    for cand in range(start, 127, -128):
        if hw % cand == 0:
            return cand
    return hw  # fallback: one full-dim block


def _norm_reg_l1_kernel(feat_ref, ind_ref, mask_ref, tgt_ref, out_ref,
                        pred_acc, loss_acc, mask_acc):
    b = pl.program_id(0)
    h = pl.program_id(1)
    nb = pl.num_programs(0)
    nh = pl.num_programs(1)

    @pl.when((b == 0) & (h == 0))
    def _():
        loss_acc[...] = jnp.zeros_like(loss_acc)
        mask_acc[...] = jnp.zeros_like(mask_acc)

    @pl.when(h == 0)
    def _():
        pred_acc[...] = jnp.zeros_like(pred_acc)

    feat = feat_ref[0]                      # (C, THW)
    idx = ind_ref[0]                        # (1, K) int32
    thw = feat.shape[1]
    k = idx.shape[1]

    # Gather-as-matmul: onehot[t, k] = (global_pos(t) == ind[b, k]).
    pos = lax.broadcasted_iota(jnp.int32, (thw, k), 0) + h * thw
    onehot = (pos == idx).astype(feat.dtype)            # (THW, K)
    pred_acc[...] += jnp.dot(feat, onehot,
                             preferred_element_type=jnp.float32)  # (C, K)

    # Per-batch epilogue: fold this batch into the vector loss accumulators.
    @pl.when(h == nh - 1)
    def _():
        m = mask_ref[0]                     # (1, K) float32
        t = tgt_ref[0]                      # (C, K) float32
        predn = pred_acc[...] / (t + EPS)
        loss_acc[...] += jnp.abs(predn * m - m)   # == |pred*m - 1*m|
        mask_acc[...] += m                        # broadcast over C

    # Global epilogue: single cross-lane reduction + scalar SMEM write.
    @pl.when((b == nb - 1) & (h == nh - 1))
    def _():
        num = jnp.sum(loss_acc[...])
        den = jnp.sum(mask_acc[...]) + EPS        # == sum of expanded mask
        out_ref[0] = num / den


def norm_reg_l1_loss_pallas(output, mask, ind, target):
    """Equivalent of NormRegL1Loss().forward(output, mask, ind, target)."""
    B, C, H, W = output.shape
    K = ind.shape[1]
    HW = H * W

    feat = output.reshape(B, C, HW)                       # free reshape
    ind3 = ind.astype(jnp.int32).reshape(B, 1, K)
    mask3 = mask.astype(jnp.float32).reshape(B, 1, K)
    tgt_t = jnp.transpose(target.astype(jnp.float32), (0, 2, 1))  # (B, C, K)

    thw = _pick_hw_tile(HW)
    n_hw = HW // thw
    grid = (B, n_hw)

    sums = pl.pallas_call(
        _norm_reg_l1_kernel,
        out_shape=jax.ShapeDtypeStruct((1,), jnp.float32),
        grid_spec=pltpu.PrefetchScalarGridSpec(
            num_scalar_prefetch=0,
            grid=grid,
            in_specs=[
                pl.BlockSpec((1, C, thw), lambda b, h: (b, 0, h)),   # feat
                pl.BlockSpec((1, 1, K), lambda b, h: (b, 0, 0)),     # ind
                pl.BlockSpec((1, 1, K), lambda b, h: (b, 0, 0)),     # mask
                pl.BlockSpec((1, C, K), lambda b, h: (b, 0, 0)),     # target^T
            ],
            out_specs=pl.BlockSpec(memory_space=pltpu.SMEM),
            scratch_shapes=[
                pltpu.VMEM((C, K), jnp.float32),   # pred accumulator
                pltpu.VMEM((C, K), jnp.float32),   # loss accumulator
                pltpu.VMEM((C, K), jnp.float32),   # expanded-mask accumulator
            ],
        ),
        compiler_params=pltpu.CompilerParams(
            dimension_semantics=("arbitrary", "arbitrary")),
    )(feat, ind3, mask3, tgt_t)

    return sums[0]


def norm_reg_l1_loss_ref(output, mask, ind, target):
    """Pure-JAX reference matching the PyTorch NormRegL1Loss forward."""
    B, C, H, W = output.shape
    feat = output.reshape(B, C, H * W)
    pred = jnp.take_along_axis(feat, ind[:, None, :].astype(jnp.int32), axis=2)
    pred = jnp.transpose(pred, (0, 2, 1))                 # (B, K, C)
    m = jnp.broadcast_to(mask.astype(jnp.float32)[:, :, None], pred.shape)
    predn = pred / (target.astype(jnp.float32) + EPS)
    ones = jnp.ones_like(predn)
    loss = jnp.sum(jnp.abs(predn * m - ones * m))
    return loss / (jnp.sum(m) + EPS)


if __name__ == "__main__":
    key = jax.random.PRNGKey(0)
    k1, k2, k3, k4 = jax.random.split(key, 4)

    B, C, H, W, K = 2, 4, 16, 16, 8

    output = jax.random.normal(k1, (B, C, H, W), jnp.float32)
    ind = jax.random.randint(k2, (B, K), 0, H * W, jnp.int32)
    mask = (jax.random.uniform(k3, (B, K)) > 0.3).astype(jnp.float32)
    target = jax.random.uniform(k4, (B, K, C), jnp.float32, 0.5, 4.0)

    loss = norm_reg_l1_loss_pallas(output, mask, ind, target)
    loss = jax.block_until_ready(loss)

    ref = jax.block_until_ready(norm_reg_l1_loss_ref(output, mask, ind, target))
    assert np.allclose(np.asarray(loss), np.asarray(ref), rtol=1e-5, atol=1e-5), (
        f"mismatch: pallas={loss} ref={ref}")

    print("KERNEL_OK")
</pallas_src>

<mosaic_0001>
module attributes {stable_mosaic.version = 11 : i64} {
  func.func @_norm_reg_l1_kernel(%arg0: i32, %arg1: i32, %arg2: memref<1x4x256xf32, #tpu.memory_space<vmem>>, %arg3: memref<1x1x8xi32, #tpu.memory_space<vmem>>, %arg4: memref<1x1x8xf32, #tpu.memory_space<vmem>>, %arg5: memref<1x4x8xf32, #tpu.memory_space<vmem>>, %arg6: memref<1xf32, #tpu.memory_space<smem>>, %arg7: memref<4x8xf32, #tpu.memory_space<vmem>>, %arg8: memref<4x8xf32, #tpu.memory_space<vmem>>, %arg9: memref<4x8xf32, #tpu.memory_space<vmem>>) attributes {dimension_semantics = [#tpu.dimension_semantics<arbitrary>, #tpu.dimension_semantics<arbitrary>], iteration_bounds = array<i64: 2, 1>, scalar_prefetch = 0 : i64, scratch_operands = 3 : i64, tpu.core_type = #tpu.core_type<tc>, window_params = [{transform_indices = @transform_0, window_bounds = array<i64: 1, 4, 256>}, {transform_indices = @transform_1, window_bounds = array<i64: 1, 1, 8>}, {transform_indices = @transform_2, window_bounds = array<i64: 1, 1, 8>}, {transform_indices = @transform_3, window_bounds = array<i64: 1, 4, 8>}, {transform_indices = @transform_4, window_bounds = array<i64: 1>}]} {
    %c0_i32 = arith.constant 0 : i32
    %0 = arith.cmpi eq, %arg0, %c0_i32 : i32
    %c0_i32_0 = arith.constant 0 : i32
    %1 = arith.cmpi eq, %arg1, %c0_i32_0 : i32
    %2 = arith.andi %0, %1 : i1
    %3 = arith.extui %2 : i1 to i32
    %c0_i32_1 = arith.constant 0 : i32
    %4 = arith.cmpi ne, %3, %c0_i32_1 : i32
    scf.if %4 {
      %cst_17 = arith.constant 0.000000e+00 : f32
      %32 = vector.broadcast %cst_17 : f32 to vector<4x8xf32>
      %c0_18 = arith.constant 0 : index
      %c0_19 = arith.constant 0 : index
      %33 = vector.load %arg8[%c0_18, %c0_19] : memref<4x8xf32, #tpu.memory_space<vmem>>, vector<4x8xf32>
      tpu.vector_store %arg8[%c0_18, %c0_19], %32 {strides = array<i32>} : memref<4x8xf32, #tpu.memory_space<vmem>>, vector<4x8xf32>,
      %cst_20 = arith.constant 0.000000e+00 : f32
      %34 = vector.broadcast %cst_20 : f32 to vector<4x8xf32>
      %c0_21 = arith.constant 0 : index
      %c0_22 = arith.constant 0 : index
      %35 = vector.load %arg9[%c0_21, %c0_22] : memref<4x8xf32, #tpu.memory_space<vmem>>, vector<4x8xf32>
      tpu.vector_store %arg9[%c0_21, %c0_22], %34 {strides = array<i32>} : memref<4x8xf32, #tpu.memory_space<vmem>>, vector<4x8xf32>,
    } else {
    }
    %c0_i32_2 = arith.constant 0 : i32
    %5 = arith.cmpi eq, %arg1, %c0_i32_2 : i32
    %6 = arith.extui %5 : i1 to i32
    %c0_i32_3 = arith.constant 0 : i32
    %7 = arith.cmpi ne, %6, %c0_i32_3 : i32
    scf.if %7 {
      %cst_17 = arith.constant 0.000000e+00 : f32
      %32 = vector.broadcast %cst_17 : f32 to vector<4x8xf32>
      %c0_18 = arith.constant 0 : index
      %c0_19 = arith.constant 0 : index
      %33 = vector.load %arg7[%c0_18, %c0_19] : memref<4x8xf32, #tpu.memory_space<vmem>>, vector<4x8xf32>
      tpu.vector_store %arg7[%c0_18, %c0_19], %32 {strides = array<i32>} : memref<4x8xf32, #tpu.memory_space<vmem>>, vector<4x8xf32>,
    } else {
    }
    %c0 = arith.constant 0 : index
    %c0_4 = arith.constant 0 : index
    %c0_5 = arith.constant 0 : index
    %8 = vector.load %arg2[%c0, %c0_4, %c0_5] : memref<1x4x256xf32, #tpu.memory_space<vmem>>, vector<1x4x256xf32>
    %9 = vector.shape_cast %8 : vector<1x4x256xf32> to vector<4x256xf32>
    %c0_6 = arith.constant 0 : index
    %c0_7 = arith.constant 0 : index
    %c0_8 = arith.constant 0 : index
    %10 = vector.load %arg3[%c0_6, %c0_7, %c0_8] : memref<1x1x8xi32, #tpu.memory_space<vmem>>, vector<1x1x8xi32>
    %11 = vector.shape_cast %10 : vector<1x1x8xi32> to vector<1x8xi32>
    %12 = tpu.iota {dimensions = array<i32: 0>} : vector<256x8xi32>
    %c256_i32 = arith.constant 256 : i32
    %13 = arith.muli %arg1, %c256_i32 : i32
    %14 = vector.broadcast %13 : i32 to vector<256x8xi32>
    %15 = arith.addi %12, %14 : vector<256x8xi32>
    %16 = vector.broadcast %11 : vector<1x8xi32> to vector<256x8xi32>
    %17 = arith.cmpi eq, %15, %16 : vector<256x8xi32>
    %18 = arith.extui %17 : vector<256x8xi1> to vector<256x8xi32>
    %19 = arith.sitofp %18 : vector<256x8xi32> to vector<256x8xf32>
    %c0_9 = arith.constant 0 : index
    %c0_10 = arith.constant 0 : index
    %20 = vector.load %arg7[%c0_9, %c0_10] : memref<4x8xf32, #tpu.memory_space<vmem>>, vector<4x8xf32>
    %cst = arith.constant dense<0.000000e+00> : vector<4x8xf32>
    %21 = tpu.matmul %9, %19, %cst {dimension_numbers = #tpu.dot_dimension_numbers<[1], [0], [0], [1], [0, 0, 1, 1], [], []>} : vector<4x256xf32>, vector<256x8xf32>, vector<4x8xf32> -> vector<4x8xf32>
    %22 = arith.addf %20, %21 : vector<4x8xf32>
    %c0_11 = arith.constant 0 : index
    %c0_12 = arith.constant 0 : index
    %23 = vector.load %arg7[%c0_11, %c0_12] : memref<4x8xf32, #tpu.memory_space<vmem>>, vector<4x8xf32>
    tpu.vector_store %arg7[%c0_11, %c0_12], %22 {strides = array<i32>} : memref<4x8xf32, #tpu.memory_space<vmem>>, vector<4x8xf32>,
    %c0_i32_13 = arith.constant 0 : i32
    %24 = arith.cmpi eq, %arg1, %c0_i32_13 : i32
    %25 = arith.extui %24 : i1 to i32
    %c0_i32_14 = arith.constant 0 : i32
    %26 = arith.cmpi ne, %25, %c0_i32_14 : i32
    scf.if %26 {
      %c0_17 = arith.constant 0 : index
      %c0_18 = arith.constant 0 : index
      %c0_19 = arith.constant 0 : index
      %32 = vector.load %arg4[%c0_17, %c0_18, %c0_19] : memref<1x1x8xf32, #tpu.memory_space<vmem>>, vector<1x1x8xf32>
      %33 = vector.shape_cast %32 : vector<1x1x8xf32> to vector<1x8xf32>
      %c0_20 = arith.constant 0 : index
      %c0_21 = arith.constant 0 : index
      %c0_22 = arith.constant 0 : index
      %34 = vector.load %arg5[%c0_20, %c0_21, %c0_22] : memref<1x4x8xf32, #tpu.memory_space<vmem>>, vector<1x4x8xf32>
      %35 = vector.shape_cast %34 : vector<1x4x8xf32> to vector<4x8xf32>
      %c0_23 = arith.constant 0 : index
      %c0_24 = arith.constant 0 : index
      %36 = vector.load %arg7[%c0_23, %c0_24] : memref<4x8xf32, #tpu.memory_space<vmem>>, vector<4x8xf32>
      %cst_25 = arith.constant 9.99999974E-5 : f32
      %37 = vector.broadcast %cst_25 : f32 to vector<4x8xf32>
      %38 = arith.addf %35, %37 : vector<4x8xf32>
      %39 = arith.divf %36, %38 : vector<4x8xf32>
      %c0_26 = arith.constant 0 : index
      %c0_27 = arith.constant 0 : index
      %40 = vector.load %arg8[%c0_26, %c0_27] : memref<4x8xf32, #tpu.memory_space<vmem>>, vector<4x8xf32>
      %41 = vector.broadcast %33 : vector<1x8xf32> to vector<4x8xf32>
      %42 = arith.mulf %39, %41 : vector<4x8xf32>
      %43 = vector.broadcast %33 : vector<1x8xf32> to vector<4x8xf32>
      %44 = arith.subf %42, %43 : vector<4x8xf32>
      %45 = math.absf %44 : vector<4x8xf32>
      %46 = arith.addf %40, %45 : vector<4x8xf32>
      %c0_28 = arith.constant 0 : index
      %c0_29 = arith.constant 0 : index
      %47 = vector.load %arg8[%c0_28, %c0_29] : memref<4x8xf32, #tpu.memory_space<vmem>>, vector<4x8xf32>
      tpu.vector_store %arg8[%c0_28, %c0_29], %46 {strides = array<i32>} : memref<4x8xf32, #tpu.memory_space<vmem>>, vector<4x8xf32>,
      %c0_30 = arith.constant 0 : index
      %c0_31 = arith.constant 0 : index
      %48 = vector.load %arg9[%c0_30, %c0_31] : memref<4x8xf32, #tpu.memory_space<vmem>>, vector<4x8xf32>
      %49 = vector.broadcast %33 : vector<1x8xf32> to vector<4x8xf32>
      %50 = arith.addf %48, %49 : vector<4x8xf32>
      %c0_32 = arith.constant 0 : index
      %c0_33 = arith.constant 0 : index
      %51 = vector.load %arg9[%c0_32, %c0_33] : memref<4x8xf32, #tpu.memory_space<vmem>>, vector<4x8xf32>
      tpu.vector_store %arg9[%c0_32, %c0_33], %50 {strides = array<i32>} : memref<4x8xf32, #tpu.memory_space<vmem>>, vector<4x8xf32>,
    } else {
    }
    %c1_i32 = arith.constant 1 : i32
    %27 = arith.cmpi eq, %arg0, %c1_i32 : i32
    %c0_i32_15 = arith.constant 0 : i32
    %28 = arith.cmpi eq, %arg1, %c0_i32_15 : i32
    %29 = arith.andi %27, %28 : i1
    %30 = arith.extui %29 : i1 to i32
    %c0_i32_16 = arith.constant 0 : i32
    %31 = arith.cmpi ne, %30, %c0_i32_16 : i32
    scf.if %31 {
      %c0_17 = arith.constant 0 : index
      %c0_18 = arith.constant 0 : index
      %32 = vector.load %arg8[%c0_17, %c0_18] : memref<4x8xf32, #tpu.memory_space<vmem>>, vector<4x8xf32>
      %33 = vector.shape_cast %32 : vector<4x8xf32> to vector<1x4x8xf32>
      %cst_19 = arith.constant dense<0.000000e+00> : vector<1xf32>
      %34 = vector.multi_reduction <add>, %33, %cst_19 [1, 2] : vector<1x4x8xf32> to vector<1xf32>
      %35 = vector.shape_cast %34 : vector<1xf32> to vector<1x1x1xf32>
      %36 = vector.extract %35[0, 0, 0] : f32 from vector<1x1x1xf32>
      %c0_20 = arith.constant 0 : index
      %c0_21 = arith.constant 0 : index
      %37 = vector.load %arg9[%c0_20, %c0_21] : memref<4x8xf32, #tpu.memory_space<vmem>>, vector<4x8xf32>
      %38 = vector.shape_cast %37 : vector<4x8xf32> to vector<1x4x8xf32>
      %cst_22 = arith.constant dense<0.000000e+00> : vector<1xf32>
      %39 = vector.multi_reduction <add>, %38, %cst_22 [1, 2] : vector<1x4x8xf32> to vector<1xf32>
      %40 = vector.shape_cast %39 : vector<1xf32> to vector<1x1x1xf32>
      %41 = vector.extract %40[0, 0, 0] : f32 from vector<1x1x1xf32>
      %cst_23 = arith.constant 9.99999974E-5 : f32
      %42 = arith.addf %41, %cst_23 : f32
      %43 = arith.divf %36, %42 : f32
      %c0_24 = arith.constant 0 : index
      %44 = memref.load %arg6[%c0_24] : memref<1xf32, #tpu.memory_space<smem>>
      memref.store %43, %arg6[%c0_24] : memref<1xf32, #tpu.memory_space<smem>>
    } else {
    }
    return
  }
  func.func @transform_0(%arg0: i32, %arg1: i32) -> (i32, i32, i32) {
    %c0_i32 = arith.constant 0 : i32
    %c0_i32_0 = arith.constant 0 : i32
    return %arg0, %c0_i32, %arg1 : i32, i32, i32
  }
  func.func @transform_1(%arg0: i32, %arg1: i32) -> (i32, i32, i32) {
    %c0_i32 = arith.constant 0 : i32
    %c0_i32_0 = arith.constant 0 : i32
    %c0_i32_1 = arith.constant 0 : i32
    return %arg0, %c0_i32, %c0_i32_0 : i32, i32, i32
  }
  func.func @transform_2(%arg0: i32, %arg1: i32) -> (i32, i32, i32) {
    %c0_i32 = arith.constant 0 : i32
    %c0_i32_0 = arith.constant 0 : i32
    %c0_i32_1 = arith.constant 0 : i32
    return %arg0, %c0_i32, %c0_i32_0 : i32, i32, i32
  }
  func.func @transform_3(%arg0: i32, %arg1: i32) -> (i32, i32, i32) {
    %c0_i32 = arith.constant 0 : i32
    %c0_i32_0 = arith.constant 0 : i32
    %c0_i32_1 = arith.constant 0 : i32
    return %arg0, %c0_i32, %c0_i32_0 : i32, i32, i32
  }
  func.func @transform_4(%arg0: i32, %arg1: i32) -> i32 {
    %c0_i32 = arith.constant 0 : i32
    %c0_i32_0 = arith.constant 0 : i32
    return %c0_i32 : i32
  }
}

</mosaic_0001>

<bundles_post_ra>
// kernel: tpu_custom_call.1
= control target key start
LH: loop header
LB: loop body
LE: loop exit
PB: predicated region body
PF: predicated region fallthrough
CT: control target
= control target key end

     0   :  { %s1424_s0 = inlined_call_operand.hbm [shape: f32[2,4,256], index: 0, kind: input, shape index: {}]   ;;  %s1425_s1 = inlined_call_operand.hbm [shape: s32[2,1,8], index: 1, kind: input, shape index: {}]   ;;  %s1426_s2 = inlined_call_operand.hbm [shape: f32[2,1,8], index: 2, kind: input, shape index: {}]   ;;  %s1427_s3 = inlined_call_operand.hbm [shape: f32[2,4,8], index: 3, kind: input, shape index: {}]   ;;  %s1428_s4 = inlined_call_operand.hbm [shape: f32[1], index: 4, kind: output, shape index: {}]  }
   0x1   :  { %1429 = sst [smem:[#allocation18_spill]] %s1425_s1 }
   0x2   :  { %9 = vsyncpa [#allocation6], 0 }
   0x3   :  { %11 = vsyncpa [#allocation6 + $0x1], 0 }
   0x4   :  { %12 = vsyncpa [#allocation9], 0 }
   0x5   :  { %14 = vsyncpa [#allocation9 + $0x1], 0 }
   0x6   :  { %15 = vsyncpa [#allocation12], 0 }
   0x7   :  { %17 = vsyncpa [#allocation12 + $0x1], 0 }
   0x8   :  { %18 = vsyncpa [#allocation7], 0  ;;  %s1169_s15 = smov 0   ;;  %s1171_s16 = smov 0  }
   0x9   :  { %s1173_s17 = smov 0   ;;  %s1175_s18 = smov 0  }
   0xa   :  { %s1177_s19 = smov 0   ;;  %s1179_s20 = smov 0  }
   0xb LB: > { %s1198_s21 = sadd.s32 4294967295, %s1138_s20   ;;  %s36_s22 = sadd.s32 1, %s1134_s19  ;;  %s1138_s20 = sphi %s1179_s20, %s24_s20   ;;  %s1134_s19 = sphi %s1177_s19, %s1438_s19   ;;  %s1130_s18 = sphi %s1175_s18, %s1437_s18   ;;  %s1126_s17 = sphi %s1173_s17, %s1436_s17   ;;  %s1122_s16 = sphi %s1171_s16, %s1435_s16   ;;  %s1118_s15 = sphi %s1169_s15, %s1434_s15  }
   0xc   : > { %p38_p0 = scmp.ge.s32.totalorder %s36_s22, 2  ;;  %s45_s23 = sadd.s32 1, %s1126_s17 }
   0xd   : > { %p52_p1 = scmp.ne.s32.totalorder %s1126_s17, %s1122_s16  ;;  %p53_p2 = scmp.eq.s32.totalorder %s1138_s20, 0 }
   0xe   : > { %s1440_s22 = smov (%p38_p0, %s36_s22), 0  ;;  %p58_p4 = scmp.ne.s32.totalorder %s1122_s16, %s1118_s15 }
   0xf   : > { %p54_p3 = por %p53_p2, %p52_p1  ;;  %s40_s24 = ssub.s32 %s1134_s19, %s1440_s22 }
  0x10   : > { %p59_p5 = scmp.eq.s32.totalorder %s1198_s21, 0  ;;  %p43_p6 = scmp.eq.s32.totalorder %s40_s24, 0 }
  0x11   : > { %p881_p8 = scmp.lt.s32.totalorder %s1138_s20, 2  ;;  %s1220_s27 = sand.u32 1, %s1126_s17  }
  0x12   : > { %p1211_p7 = por %p59_p5, %p58_p4  ;;  %s203_s29 = sand.u32 1, %s1138_s20  }
  0x13   : > { %s1217_s26 = scalar_select %p43_p6, %s1126_s17, %s45_s23  }
  0x14   : > { %p1222_p9 = pnand %p881_p8, %p54_p3  ;;  %s1432_s1 = sld [smem:[#allocation18_spill]] }
  0x15   : > { %s206_s7 = scalar_lea.vmem [#allocation8], %s1220_s27  ;;  %p774_p10 = scmp.ge.s32.totalorder %s1138_s20, 1 }
  0x16   : > { %s213_s8 = sshll.u32 %s206_s7, 4  ;;  %s204_s10 = scalar_lea.sflag [#allocation9], %s203_s29  ;;  %s214_s8 = int_to_ptr.vmem [resolvable:$true] %s213_s8 }
  0x17   : > { %p254_p11 = scmp.lt.s32.totalorder %s1138_s20, 3  ;;  %s769_s12 = sshll.u32 %s1220_s27, 3 }
  0x18   : > { %s847_s13 = sshll.u32 %s1134_s19, 3  ;;  %s185_s24 = scalar_lea.vmem [#allocation5], %s769_s12 }
  0x19   : > { %p1236_p12 = pnand %p774_p10, %p254_p11  ;;  %s192_s23 = scalar_lea.hbm %s1424_s0, %s847_s13 }
  0x1a   : > { %s209_s6 = scalar_lea.hbm %s1432_s1, %s1134_s19  ;;  %s196_s30 = sshll.u32 %s185_s24, 4  ;;  %s197_s30 = int_to_ptr.vmem [resolvable:$true] %s196_s30 }
  0x1b   : > { %s211_s9 = sshll.u32 %s209_s6, 4  ;;  %s194_s5 = sshll.u32 %s192_s23, 4  ;;  %s212_s9 = int_to_ptr.hbm [resolvable:$true] %s211_s9  ;;  %s195_s5 = int_to_ptr.hbm [resolvable:$true] %s194_s5 }
  0x1c   : > { %874 = dma.hbm_to_vmem [thread:$0]  (!%p1222_p9), %s212_s9, 16, %s214_s8, %s204_s10  }
  0x1d   : > { %s182_s29 = scalar_lea.sflag [#allocation6], %s1220_s27  ;;  %s226_s8 = scalar_lea.hbm %s1426_s2, %s1134_s19 }
  0x1e   : > { %871 = dma.hbm_to_vmem [thread:$0]  (!%p1222_p9), %s195_s5, 128, %s197_s30, %s182_s29  }
  0x1f   : > { %s223_s9 = scalar_lea.vmem [#allocation10], %s1220_s27  ;;  %s228_s14 = sshll.u32 %s226_s8, 4  ;;  %s229_s14 = int_to_ptr.hbm [resolvable:$true] %s228_s14 }
  0x20   : > { %s230_s1 = sshll.u32 %s223_s9, 4  ;;  %s772_s12 = sshll.u32 %s1220_s27, 2  ;;  %s231_s1 = int_to_ptr.vmem [resolvable:$true] %s230_s1 }
  0x21   : > { %877 = dma.hbm_to_vmem [thread:$0]  (!%p1222_p9), %s229_s14, 16, %s231_s1, %s204_s10  }
  0x22   : > { %s773_s13 = sshll.u32 %s1134_s19, 2  ;;  %s241_s5 = scalar_lea.vmem [#allocation11], %s772_s12 }
  0x23   : > { %s245_s24 = scalar_lea.hbm %s1427_s3, %s773_s13  ;;  %s249_s29 = sshll.u32 %s241_s5, 4  ;;  %s250_s29 = int_to_ptr.vmem [resolvable:$true] %s249_s29 }
  0x24   : > { %s247_s30 = sshll.u32 %s245_s24, 4  ;;  %s238_s6 = scalar_lea.sflag [#allocation12], %s1220_s27  ;;  %s248_s30 = int_to_ptr.hbm [resolvable:$true] %s247_s30 }
  0x25   : > { %880 = dma.hbm_to_vmem [thread:$0]  (!%p1222_p9), %s248_s30, 64, %s250_s29, %s238_s6  }
  0x26   : > { %258 = sbr.rel (%p1236_p12) target bundleno = 517 (0x205), region = 36  ;;  %s1266_s1 = sand.u32 (!%p1236_p12), 1, %s1122_s16  }
  0x27   : > { %s775_s10 = sshll.u32 (!%p1236_p12), %s1266_s1, 3  ;;  %s261_s7 = scalar_lea.sflag (!%p1236_p12), [#allocation6], %s1266_s1 }
  0x28   : > { %s264_s8 = scalar_lea.vmem (!%p1236_p12), [#allocation5], %s775_s10 }
  0x2b   : > { %1101 = dma.done.wait (%p1211_p7), %s261_s7, 128  }
  0x2c   : > { %1103 = vsyncadd (%p1211_p7), %s261_s7, 4294967168  ;;  %s270_s27 = sand.u32 1, %s1198_s21   ;;  %s273_s11 = scalar_lea.vmem [#allocation8], %s1266_s1 }
  0x2d   : > { %s271_s28 = scalar_lea.sflag [#allocation9], %s270_s27 }
  0x2e   : > { %1105 = dma.done.wait (%p1211_p7), %s271_s28, 32  }
  0x2f   : > { %1107 = vsyncadd (%p1211_p7), %s271_s28, 4294967264  ;;  %s776_s9 = sshll.u32 %s1266_s1, 2  ;;  %s282_s14 = scalar_lea.vmem [#allocation10], %s1266_s1 }
  0x30   : > { %s289_s12 = scalar_lea.sflag [#allocation12], %s1266_s1  ;;  %s1283_s13 = scalar_lea.vmem [#allocation11], %s776_s9 }
  0x31   : > { %1109 = dma.done.wait (%p1211_p7), %s289_s12, 64  }
  0x32   : > { %1111 = vsyncadd (%p1211_p7), %s289_s12, 4294967232  ;;  %p327_p13 = scmp.eq.s32.totalorder %s1130_s18, 0 }
  0x33   : > { %vm333_vm0 = vcmask (%p327_p13), 60416   ;;  %v1140_v0 = vmov (%p327_p13), 0.0  }
  0x34   : > { %332 = sbr.rel (!%p327_p13) target bundleno = 57 (0x39), region = 56  ;;  %334 = vst.msk [vmem:[#allocation3] sm:$0xf] (%p327_p13), %vm333_vm0, %v1140_v0 }
  0x35   : > { %335 = vst.msk [vmem:[#allocation4] sm:$0xf] (%p327_p13), %vm333_vm0, %v1140_v0 }
  0x39 PF: > { %v343_v1 = vlaneseq  ;;  %v341_v2 = vld [vmem:[%s264_s8] sm:$0xff]  ;;  %v1141_v13 = vmov 1.0   ;;  %p591_p0 = scmp.eq.s32.totalorder %s1130_s18, 1  ;;  %v1142_v39 = vmov 0.0   ;;  %v561_v40 = vld [vmem:[%s1283_s13] sm:$0xf] }
  0x3a   : > { %509 = vst [vmem:[#allocation1] ss:$2 sm:$0xff] %v341_v2  ;;  %v1292_v4 = vld [vmem:[%s273_s11] ss:$0 sm:$0xff]  ;;  %v563_v41 = vadd.f32 0.0001, %v561_v40 }
  0x3b   : > { %v1290_v3 = vshrl.u32 %v343_v1, 7  ;;  %v937_v42 = vld [vmem:[%s282_s14] ss:$0 sm:$0xff]  ;;  %v579_v0 = vld [vmem:[#allocation3] sm:$0xf] }
  0x3c   : > { %938 = vrcp.f32 %v563_v41  ;;  %v588_v44 = vld [vmem:[#allocation4] sm:$0xf]  ;;  %v575_v53 = vand.u32 2147483648, %v563_v41  ;;  %v573_v56 = vand.u32 2147483647, %v563_v41 }
  0x3d   : > { %v359_v5 = vadd.s32 120, %v1290_v3  ;;  %v375_v6 = vadd.s32 248, %v1290_v3  ;;  %v358_v7 = vadd.s32 112, %v1290_v3  ;;  %v374_v8 = vadd.s32 240, %v1290_v3 }
  0x3e   : > { %v357_v9 = vadd.s32 104, %v1290_v3  ;;  %v373_v10 = vadd.s32 232, %v1290_v3  ;;  %v356_v11 = vadd.s32 96, %v1290_v3  ;;  %v372_v12 = vadd.s32 224, %v1290_v3 }
  0x3f   : > { %vm426_vm1 = vcmp.eq.s32.totalorder %v359_v5, %v1292_v4  ;;  %vm442_vm2 = vcmp.eq.s32.totalorder %v375_v6, %v1292_v4  ;;  %vm425_vm3 = vcmp.eq.s32.totalorder %v358_v7, %v1292_v4  ;;  %vm441_vm4 = vcmp.eq.s32.totalorder %v374_v8, %v1292_v4 }
  0x40   : > { %810 = vmatpush.msk.msra.mxu0 %vm426_vm1, %v1141_v13  ;;  %826 = vmatpush.msk.msra.mxu1 %vm442_vm2, %v1141_v13  ;;  %vm424_vm5 = vcmp.eq.s32.totalorder %v357_v9, %v1292_v4  ;;  %vm440_vm6 = vcmp.eq.s32.totalorder %v373_v10, %v1292_v4  ;;  %v355_v14 = vadd.s32 88, %v1290_v3  ;;  %v371_v15 = vadd.s32 216, %v1290_v3 }
  0x41   : > { %vm423_vm7 = vcmp.eq.s32.totalorder %v356_v11, %v1292_v4  ;;  %vm439_vm8 = vcmp.eq.s32.totalorder %v372_v12, %v1292_v4  ;;  %v354_v16 = vadd.s32 80, %v1290_v3  ;;  %v370_v17 = vadd.s32 208, %v1290_v3  ;;  %v510_v37 = vld.sshfl [vmem:[#allocation1] sm:$0xff pattern:$0x75316420] }
  0x42   : > { %811 = vmatpush.msk.msra.mxu0 %vm425_vm3, %v1141_v13  ;;  %827 = vmatpush.msk.msra.mxu1 %vm441_vm4, %v1141_v13  ;;  %vm422_vm9 = vcmp.eq.s32.totalorder %v355_v14, %v1292_v4  ;;  %vm438_vm10 = vcmp.eq.s32.totalorder %v371_v15, %v1292_v4  ;;  %v353_v18 = vadd.s32 72, %v1290_v3  ;;  %v369_v19 = vadd.s32 200, %v1290_v3  ;;  %v511_v38 = vld.sshfl [vmem:[#allocation1 + $0x8] sm:$0xff pattern:$0x75316420]  ;;  %v939_v43 = vpop.eup %938 }
  0x43   : > { %vm421_vm11 = vcmp.eq.s32.totalorder %v354_v16, %v1292_v4  ;;  %vm437_vm12 = vcmp.eq.s32.totalorder %v370_v17, %v1292_v4  ;;  %v352_v20 = vadd.s32 64, %v1290_v3  ;;  %v368_v21 = vadd.s32 192, %v1290_v3 }
  0x44   : > { %812 = vmatpush.msk.msra.mxu0 %vm424_vm5, %v1141_v13  ;;  %828 = vmatpush.msk.msra.mxu1 %vm440_vm6, %v1141_v13  ;;  %vm420_vm13 = vcmp.eq.s32.totalorder %v353_v18, %v1292_v4  ;;  %vm436_vm14 = vcmp.eq.s32.totalorder %v369_v19, %v1292_v4  ;;  %v351_v22 = vadd.s32 56, %v1290_v3  ;;  %v367_v23 = vadd.s32 184, %v1290_v3 }
  0x45   : > { %vm419_vm15 = vcmp.eq.s32.totalorder %v352_v20, %v1292_v4  ;;  %vm435_vm0 = vcmp.eq.s32.totalorder %v368_v21, %v1292_v4  ;;  %v350_v24 = vadd.s32 48, %v1290_v3  ;;  %v366_v25 = vadd.s32 176, %v1290_v3 }
  0x46   : > { %813 = vmatpush.msk.msra.mxu0 %vm423_vm7, %v1141_v13  ;;  %829 = vmatpush.msk.msra.mxu1 %vm439_vm8, %v1141_v13  ;;  %vm418_vm1 = vcmp.eq.s32.totalorder %v351_v22, %v1292_v4  ;;  %vm434_vm2 = vcmp.eq.s32.totalorder %v367_v23, %v1292_v4  ;;  %v349_v26 = vadd.s32 40, %v1290_v3  ;;  %v365_v27 = vadd.s32 168, %v1290_v3 }
  0x47   : > { %vm417_vm3 = vcmp.eq.s32.totalorder %v350_v24, %v1292_v4  ;;  %vm433_vm4 = vcmp.eq.s32.totalorder %v366_v25, %v1292_v4  ;;  %v348_v28 = vadd.s32 32, %v1290_v3  ;;  %v364_v29 = vadd.s32 160, %v1290_v3 }
  0x48   : > { %814 = vmatpush.msk.msra.mxu0 %vm422_vm9, %v1141_v13  ;;  %830 = vmatpush.msk.msra.mxu1 %vm438_vm10, %v1141_v13  ;;  %vm416_vm5 = vcmp.eq.s32.totalorder %v349_v26, %v1292_v4  ;;  %vm432_vm6 = vcmp.eq.s32.totalorder %v365_v27, %v1292_v4  ;;  %v347_v30 = vadd.s32 24, %v1290_v3  ;;  %v363_v31 = vadd.s32 152, %v1290_v3 }
  0x49   : > { %vm415_vm7 = vcmp.eq.s32.totalorder %v348_v28, %v1292_v4  ;;  %vm431_vm8 = vcmp.eq.s32.totalorder %v364_v29, %v1292_v4  ;;  %v346_v32 = vadd.s32 16, %v1290_v3  ;;  %v362_v33 = vadd.s32 144, %v1290_v3 }
  0x4a   : > { %815 = vmatpush.msk.msra.mxu0 %vm421_vm11, %v1141_v13  ;;  %831 = vmatpush.msk.msra.mxu1 %vm437_vm12, %v1141_v13  ;;  %vm414_vm9 = vcmp.eq.s32.totalorder %v347_v30, %v1292_v4  ;;  %vm430_vm10 = vcmp.eq.s32.totalorder %v363_v31, %v1292_v4  ;;  %v345_v34 = vadd.s32 8, %v1290_v3  ;;  %v361_v35 = vadd.s32 136, %v1290_v3 }
  0x4b   : > { %vm413_vm11 = vcmp.eq.s32.totalorder %v346_v32, %v1292_v4  ;;  %vm429_vm12 = vcmp.eq.s32.totalorder %v362_v33, %v1292_v4  ;;  %v360_v36 = vadd.s32 128, %v1290_v3  ;;  %v589_v45 = vadd.f32 %v937_v42, %v588_v44 }
  0x4c   : > { %816 = vmatpush.msk.msra.mxu0 %vm420_vm13, %v1141_v13  ;;  %832 = vmatpush.msk.msra.mxu1 %vm436_vm14, %v1141_v13  ;;  %vm412_vm13 = vcmp.eq.s32.totalorder %v345_v34, %v1292_v4  ;;  %vm428_vm14 = vcmp.eq.s32.totalorder %v361_v35, %v1292_v4  ;;  %v565_v46 = vmul.f32 %v939_v43, %v563_v41  ;;  %v576_v57 = vor.u32 1.1754944e-38, %v575_v53 }
  0x4e   : > { %817 = vmatpush.msk.msra.mxu0 %vm419_vm15, %v1141_v13  ;;  %833 = vmatpush.msk.msra.mxu1 %vm435_vm0, %v1141_v13  ;;  %vm411_vm15 = vcmp.eq.s32.totalorder %v1290_v3, %v1292_v4  ;;  %vm427_vm0 = vcmp.eq.s32.totalorder %v360_v36, %v1292_v4  ;;  %v566_v47 = vsub.f32 1.0, %v565_v46 }
  0x50   : > { %818 = vmatpush.msk.msra.mxu0 %vm418_vm1, %v1141_v13  ;;  %834 = vmatpush.msk.msra.mxu1 %vm434_vm2, %v1141_v13  ;;  %vm339_vm1 = vcmask 60416   ;;  %v567_v48 = vmul.f32 %v939_v43, %v566_v47  ;;  %vm569_vm2 = vweird.f32 %v563_v41 }
  0x51   : > { %340 = vst.msk [vmem:[#allocation2] sm:$0xf] %vm339_vm1, %v1142_v39 }
  0x52   : > { %819 = vmatpush.msk.msra.mxu0 %vm417_vm3, %v1141_v13  ;;  %835 = vmatpush.msk.msra.mxu1 %vm433_vm4, %v1141_v13  ;;  %590 = vst.msk [vmem:[#allocation4] sm:$0xf] %vm339_vm1, %v589_v45  ;;  %vm570_vm3 = vweird.f32 %v939_v43  ;;  %v568_v55 = vadd.f32 %v939_v43, %v567_v48 }
  0x53   : > { %vm571_vm4 = vmor %vm569_vm2, %vm570_vm3 }
  0x54   : > { %820 = vmatpush.msk.msra.mxu0 %vm416_vm5, %v1141_v13  ;;  %836 = vmatpush.msk.msra.mxu1 %vm432_vm6, %v1141_v13  ;;  %v572_v58 = vsel %vm571_vm4, %v939_v43, %v568_v55  ;;  %vm574_vm5 = vcmp.eq.f32.partialorder %v573_v56, 8.507059e+37 }
  0x55   : > { %v577_v59 = vsel %vm574_vm5, %v576_v57, %v572_v58 }
  0x56   : > { %821 = vmatpush.msk.msra.mxu0 %vm415_vm7, %v1141_v13  ;;  %837 = vmatpush.msk.msra.mxu1 %vm431_vm8, %v1141_v13 }
  0x58   : > { %822 = vmatpush.msk.msra.mxu0 %vm414_vm9, %v1141_v13  ;;  %838 = vmatpush.msk.msra.mxu1 %vm430_vm10, %v1141_v13  ;;  %v507_v50 = vld [vmem:[#allocation2] sm:$0xf] }
  0x59   : > { %v607_v5 = vld [vmem:[#allocation4] sm:$0xf] (%p591_p0) }
  0x5a   : > { %823 = vmatpush.msk.msra.mxu0 %vm413_vm11, %v1141_v13  ;;  %839 = vmatpush.msk.msra.mxu1 %vm429_vm12, %v1141_v13  ;;  %v608_v6 = vsel (%p591_p0), %vm339_vm1, %v607_v5, 0.0 }
  0x5c   : > { %824 = vmatpush.msk.msra.mxu0 %vm412_vm13, %v1141_v13  ;;  %840 = vmatpush.msk.msra.mxu1 %vm428_vm14, %v1141_v13 }
  0x5e   : > { %825 = vmatpush.msk.msra.mxu0 %vm411_vm15, %v1141_v13  ;;  %841 = vmatpush.msk.msra.mxu1 %vm427_vm0, %v1141_v13 }
  0x5f   : > { %530 = vmatmul.f32.vlgmr.msra.gmra.mxu0 %v510_v37  ;;  %550 = vmatmul.f32.vlgmr.msra.gmra.mxu1 %v511_v38 }
  0xdc   : > { %v531_v49 = vpop.f32.mrf.mxu0  ;;  %v551_v51 = vpop.f32.mrf.mxu1 }
  0xdd   : > { %v552_v52 = vadd.f32 %v551_v51, %v531_v49 }
  0xdf   : > { %v554_v54 = vadd.f32 %v552_v52, %v507_v50 }
  0xe1   : > { %556 = vst.msk [vmem:[#allocation2] sm:$0xf] %vm339_vm1, %v554_v54 }
  0xe8   : > { %v562_v60 = vld [vmem:[#allocation2] sm:$0xf] }
  0xe9   : > { %v578_v61 = vmul.f32 %v577_v59, %v562_v60 }
  0xeb   : > { %v583_v62 = vmul.f32 %v937_v42, %v578_v61 }
  0xed   : > { %v584_v63 = vsub.f32 %v583_v62, %v937_v42 }
  0xef   : > { %v585_v1 = vand.u32 2147483647, %v584_v63  ;;  %595 = sbr.rel (!%p591_p0) target bundleno = 511 (0x1ff), region = 68 }
  0xf1   : > { %v586_v2 = vadd.f32 %v585_v1, %v579_v0 }
  0xf3   : > { %587 = vst.msk [vmem:[#allocation3] sm:$0xf] %vm339_vm1, %v586_v2 }
  0xfa   : > { %v596_v3 = vld [vmem:[#allocation3] sm:$0xf] }
  0xfb   : > { %v597_v4 = vsel %vm339_vm1, %v596_v3, 0.0 }
  0xfc   : > { %598 = vadd.xlane.f32.xlu0 %v597_v4 }
 0x104   : > { %609 = vadd.xlane.f32.xlu0 %v608_v6 }
 0x16f   : > { %v599_v7 = vpop.xlane.xlu0 %598 }
 0x170   : > { %v600_v8 = vrot.slane %v599_v7, 4 }
 0x172   : > { %v601_v9 = vadd.f32 %v600_v8, %v599_v7 }
 0x174   : > { %v602_v10 = vrot.slane %v601_v9, 2 }
 0x176   : > { %v603_v11 = vadd.f32 %v602_v10, %v601_v9 }
 0x177   : > { %v610_v12 = vpop.xlane.xlu0 %609 }
 0x178   : > { %v611_v13 = vrot.slane %v610_v12, 4  ;;  %v604_v14 = vrot.slane %v603_v11, 1 }
 0x17a   : > { %v612_v15 = vadd.f32 %v611_v13, %v610_v12  ;;  %v605_v16 = vadd.f32 %v604_v14, %v603_v11 }
 0x17c   : > { %v613_v17 = vrot.slane %v612_v15, 2  ;;  %850 = vpush %v605_v16 }
 0x17e   : > { %v614_v18 = vadd.f32 %v613_v17, %v612_v15 }
 0x180   : > { %v615_v19 = vrot.slane %v614_v18, 1 }
 0x182   : > { %v616_v20 = vadd.f32 %v615_v19, %v614_v18 }
 0x184   : > { %852 = vpush %v616_v20 }
 0x1ad   : > { %s851_s18 = spop %850 }
 0x1b5   : > { %s853_s25 = spop %852 }
 0x1b6   : > { %s618_s15 = sadd.f32 0.0001, %s853_s25 }
 0x1b8   : > { %v619_v21 = vstv %s618_s15 }
 0x1b9   : > { %940 = vrcp.f32 %v619_v21  ;;  %v631_v25 = vand.u32 2147483648, %v619_v21  ;;  %v629_v27 = vand.u32 2147483647, %v619_v21  ;;  %vm625_vm7 = vweird.f32 %v619_v21 }
 0x1bb   : > { %v632_v29 = vor.u32 1.1754944e-38, %v631_v25  ;;  %vm630_vm9 = vcmp.eq.f32.partialorder %v629_v27, 8.507059e+37 }
 0x1bf   : > { %v941_v22 = vpop.eup %940 }
 0x1c0   : > { %v621_v23 = vmul.f32 %v941_v22, %v619_v21  ;;  %vm626_vm6 = vweird.f32 %v941_v22 }
 0x1c1   : > { %vm627_vm8 = vmor %vm625_vm7, %vm626_vm6 }
 0x1c2   : > { %v622_v24 = vsub.f32 1.0, %v621_v23 }
 0x1c4   : > { %v623_v26 = vmul.f32 %v941_v22, %v622_v24 }
 0x1c6   : > { %v624_v28 = vadd.f32 %v941_v22, %v623_v26 }
 0x1c8   : > { %v628_v30 = vsel %vm627_vm8, %v941_v22, %v624_v28 }
 0x1c9   : > { %v633_v31 = vsel %vm630_vm9, %v632_v29, %v628_v30 }
 0x1ca   : > { %854 = vpush %v633_v31 }
 0x1fb   : > { %s855_s23 = spop %854 }
 0x1fc   : > { %s635_s24 = smul.f32 %s855_s23, %s851_s18 }
 0x1fe   : > { %637 = sst [smem:[#allocation13]] %s635_s24 }
 0x1ff PF: > { %p882_p1 = scmp.eq.s32.totalorder %s1198_s21, 1  ;;  %s644_s29 = sshll.u32 %s1428_s4, 4  ;;  %s645_s29 = int_to_ptr.hbm [resolvable:$true] %s644_s29 }
 0x200   : > { %s1143_s6 = smov [#allocation13]  }
 0x201   : > { %865 = dma.smem_to_hbm (%p882_p1), %s1143_s6, 16, %s645_s29, [#allocation7]  }
 0x202   : > { %1113 = dma.done.wait (%p882_p1), [#allocation7], 16  }
 0x203   : > { %1115 = vsyncadd (%p882_p1), [#allocation7], 4294967280 }
 0x204   : > { %653 = sfence }
 0x205 PF: > { %s24_s20 = sadd.s32 1, %s1138_s20   ;;  %s1434_s15 = smov %s1122_s16 }
 0x206   : > { %p21_p2 = scmp.ge.s32.totalorder %s24_s20, 4   ;;  %s1435_s16 = smov %s1126_s17 }
 0x207   : > { %s1436_s17 = smov %s1217_s26  ;;  %s1437_s18 = smov %s1134_s19 }
 0x208   : > { %s1438_s19 = smov %s1440_s22  ;;  %23 = sbr.rel (!%p21_p2) target bundleno = 11 (0xb), region = 127 }
 0x20d   :  { %659 = vsyncpa [#allocation6], 1 }
 0x20e   :  { %661 = vsyncpa [#allocation6 + $0x1], 1 }
 0x20f   :  { %662 = vsyncpa [#allocation9], 1 }
 0x210   :  { %664 = vsyncpa [#allocation9 + $0x1], 1 }
 0x211   :  { %665 = vsyncpa [#allocation12], 1 }
 0x212   :  { %667 = vsyncpa [#allocation12 + $0x1], 1 }
 0x213   :  { %668 = vsyncpa [#allocation7], 1 }
 0x214   :  { %670 = vsyncpa [#allocation7 + $0x1], 1 }

</bundles_post_ra>
